<compile_context>
chip_gen: v6e
topology: v6e:2x2x1
jax: 0.10.0
libtpu: 0.0.40
codegen_flags: <defaults>
</compile_context>

<pallas_src>
import jax
import jax.numpy as jnp
from jax.experimental import pallas as pl
from jax.experimental.pallas import tpu as pltpu


def _linear_component_kernel(ctrl_ref, state_ref, wc_ref, ws_ref, b_ref, o_ref):
    # ctrl_ref:  (TN, C)    state_ref: (TN, S)
    # wc_ref:    (C, S)     ws_ref:    (S, S)     b_ref: (1, S)
    # o_ref:     (TN, S)
    acc = jnp.dot(ctrl_ref[...], wc_ref[...], preferred_element_type=jnp.float32)
    acc = acc + jnp.dot(state_ref[...], ws_ref[...],
                        preferred_element_type=jnp.float32)
    o_ref[...] = (acc + b_ref[...]).astype(o_ref.dtype)


def _pick_tile_n(n: int, cap: int) -> int:
    if n <= cap:
        return n                      # single block; block dim == full dim is valid
    return max(8, (cap // 8) * 8)     # keep sublane (8) divisibility


def linear_component_forward(control, state, weight, mean, std, *, tile_n_cap=2048):
    """
    control: (N, C) float32
    state:   (N, S) float32
    weight:  (S, C + S) float32   (nn.Linear weight, bias=False)
    mean, std: (C + S,) float32   (semiphysical normalization statistics)
    returns: (N, S) float32  ==  ((cat([control, state], 1) - mean) / std) @ weight.T
    """
    control = control.astype(jnp.float32)
    state = state.astype(jnp.float32)
    n, c = control.shape
    s = state.shape[1]
    f = c + s

    # --- Fold normalization into the (tiny) parameters: one-time F x S work. ---
    # TODO(synk): clamp std away from zero at parameter-load time if real data
    # can produce zero-variance features.
    w32 = weight.astype(jnp.float32)
    inv_std = (1.0 / std).astype(jnp.float32)                 # (F,)
    wt_norm = w32.T * inv_std[:, None]                        # (F, S)
    bias = -jnp.dot(mean.astype(jnp.float32) * inv_std, w32.T)  # (S,)
    wc = wt_norm[:c]                                          # (C, S)
    ws = wt_norm[c:]                                          # (S, S)
    b2 = bias.reshape(1, s)                                   # (1, S)

    tn = _pick_tile_n(n, tile_n_cap)
    grid = (pl.cdiv(n, tn),)

    cost = pl.CostEstimate(
        flops=2 * n * f * s,
        transcendentals=0,
        bytes_accessed=4 * (n * f + n * s + f * s + s),
    )

    return pl.pallas_call(
        _linear_component_kernel,
        out_shape=jax.ShapeDtypeStruct((n, s), jnp.float32),
        grid=grid,
        in_specs=[
            pl.BlockSpec((tn, c), lambda i: (i, 0)),   # control tile (pipelined)
            pl.BlockSpec((tn, s), lambda i: (i, 0)),   # state tile   (pipelined)
            pl.BlockSpec((c, s), lambda i: (0, 0)),    # folded weight, VMEM-resident
            pl.BlockSpec((s, s), lambda i: (0, 0)),    # folded weight, VMEM-resident
            pl.BlockSpec((1, s), lambda i: (0, 0)),    # folded bias,   VMEM-resident
        ],
        out_specs=pl.BlockSpec((tn, s), lambda i: (i, 0)),
        compiler_params=pltpu.CompilerParams(
            dimension_semantics=("parallel",),
            vmem_limit_bytes=32 * 1024 * 1024,
        ),
        cost_estimate=cost,
    )(control, state, wc, ws, b2)


def _reference(control, state, weight, mean, std):
    x = jnp.concatenate([control, state], axis=1)
    return ((x - mean) / std) @ weight.T


if __name__ == "__main__":
    key = jax.random.PRNGKey(0)
    k_ctrl, k_state, k_w, k_mean, k_std, k_big1, k_big2 = jax.random.split(key, 7)

    # Small shapes consistent with the module: (N, control_dim), (N, state_dim).
    N, control_dim, state_dim = 8, 4, 4
    features = control_dim + state_dim  # get_semiphysical_features()

    control = jax.random.normal(k_ctrl, (N, control_dim), dtype=jnp.float32)
    state = jax.random.normal(k_state, (N, state_dim), dtype=jnp.float32)

    # Deterministic synthetic "trained" parameters (normally produced by
    # train_semiphysical / load_parameters); std kept strictly positive.
    weight = jax.random.normal(k_w, (state_dim, features), dtype=jnp.float32) * 0.1
    mean = jax.random.normal(k_mean, (features,), dtype=jnp.float32) * 0.5
    std = jnp.abs(jax.random.normal(k_std, (features,), dtype=jnp.float32)) + 0.5

    out = linear_component_forward(control, state, weight, mean, std)
    out = jax.block_until_ready(out)
    ref = _reference(control, state, weight, mean, std)
    assert out.shape == (N, state_dim)
    assert jnp.allclose(out, ref, atol=1e-4, rtol=1e-4)

    # Larger batch exercising the tiled, double-buffered, parallel-grid path.
    N_big = 2048
    ctrl_big = jax.random.normal(k_big1, (N_big, control_dim), dtype=jnp.float32)
    state_big = jax.random.normal(k_big2, (N_big, state_dim), dtype=jnp.float32)
    out_big = linear_component_forward(
        ctrl_big, state_big, weight, mean, std, tile_n_cap=512
    )
    out_big = jax.block_until_ready(out_big)
    ref_big = _reference(ctrl_big, state_big, weight, mean, std)
    assert out_big.shape == (N_big, state_dim)
    assert jnp.allclose(out_big, ref_big, atol=1e-4, rtol=1e-4)

    print("KERNEL_OK")
</pallas_src>

<mosaic_0001>
module attributes {stable_mosaic.version = 11 : i64} {
  func.func @_linear_component_kernel(%arg0: i32, %arg1: memref<8x4xf32, #tpu.memory_space<vmem>>, %arg2: memref<8x4xf32, #tpu.memory_space<vmem>>, %arg3: memref<4x4xf32, #tpu.memory_space<vmem>>, %arg4: memref<4x4xf32, #tpu.memory_space<vmem>>, %arg5: memref<1x4xf32, #tpu.memory_space<vmem>>, %arg6: memref<8x4xf32, #tpu.memory_space<vmem>>) attributes {dimension_semantics = [#tpu.dimension_semantics<parallel>], iteration_bounds = array<i64: 1>, scalar_prefetch = 0 : i64, scratch_operands = 0 : i64, tpu.core_type = #tpu.core_type<tc>, window_params = [{transform_indices = @transform_0, window_bounds = array<i64: 8, 4>}, {transform_indices = @transform_1, window_bounds = array<i64: 8, 4>}, {pipeline_mode = #tpu.pipeline_mode<synchronous>, transform_indices = @transform_2, window_bounds = array<i64: 4, 4>}, {pipeline_mode = #tpu.pipeline_mode<synchronous>, transform_indices = @transform_3, window_bounds = array<i64: 4, 4>}, {pipeline_mode = #tpu.pipeline_mode<synchronous>, transform_indices = @transform_4, window_bounds = array<i64: 1, 4>}, {transform_indices = @transform_5, window_bounds = array<i64: 8, 4>}]} {
    %c0 = arith.constant 0 : index
    %c0_0 = arith.constant 0 : index
    %0 = vector.load %arg1[%c0, %c0_0] : memref<8x4xf32, #tpu.memory_space<vmem>>, vector<8x4xf32>
    %c0_1 = arith.constant 0 : index
    %c0_2 = arith.constant 0 : index
    %1 = vector.load %arg3[%c0_1, %c0_2] : memref<4x4xf32, #tpu.memory_space<vmem>>, vector<4x4xf32>
    %cst = arith.constant dense<0.000000e+00> : vector<8x4xf32>
    %2 = tpu.matmul %0, %1, %cst {dimension_numbers = #tpu.dot_dimension_numbers<[1], [0], [0], [1], [0, 0, 1, 1], [], []>} : vector<8x4xf32>, vector<4x4xf32>, vector<8x4xf32> -> vector<8x4xf32>
    %c0_3 = arith.constant 0 : index
    %c0_4 = arith.constant 0 : index
    %3 = vector.load %arg2[%c0_3, %c0_4] : memref<8x4xf32, #tpu.memory_space<vmem>>, vector<8x4xf32>
    %c0_5 = arith.constant 0 : index
    %c0_6 = arith.constant 0 : index
    %4 = vector.load %arg4[%c0_5, %c0_6] : memref<4x4xf32, #tpu.memory_space<vmem>>, vector<4x4xf32>
    %cst_7 = arith.constant dense<0.000000e+00> : vector<8x4xf32>
    %5 = tpu.matmul %3, %4, %cst_7 {dimension_numbers = #tpu.dot_dimension_numbers<[1], [0], [0], [1], [0, 0, 1, 1], [], []>} : vector<8x4xf32>, vector<4x4xf32>, vector<8x4xf32> -> vector<8x4xf32>
    %6 = arith.addf %2, %5 : vector<8x4xf32>
    %c0_8 = arith.constant 0 : index
    %c0_9 = arith.constant 0 : index
    %7 = vector.load %arg5[%c0_8, %c0_9] : memref<1x4xf32, #tpu.memory_space<vmem>>, vector<1x4xf32>
    %8 = vector.broadcast %7 : vector<1x4xf32> to vector<8x4xf32>
    %9 = arith.addf %6, %8 : vector<8x4xf32>
    %c0_10 = arith.constant 0 : index
    %c0_11 = arith.constant 0 : index
    %10 = vector.load %arg6[%c0_10, %c0_11] : memref<8x4xf32, #tpu.memory_space<vmem>>, vector<8x4xf32>
    tpu.vector_store %arg6[%c0_10, %c0_11], %9 {strides = array<i32>} : memref<8x4xf32, #tpu.memory_space<vmem>>, vector<8x4xf32>,
    return
  }
  func.func @transform_0(%arg0: i32) -> (i32, i32) {
    %c0_i32 = arith.constant 0 : i32
    %c0_i32_0 = arith.constant 0 : i32
    return %arg0, %c0_i32 : i32, i32
  }
  func.func @transform_1(%arg0: i32) -> (i32, i32) {
    %c0_i32 = arith.constant 0 : i32
    %c0_i32_0 = arith.constant 0 : i32
    return %arg0, %c0_i32 : i32, i32
  }
  func.func @transform_2(%arg0: i32) -> (i32, i32) {
    %c0_i32 = arith.constant 0 : i32
    %c0_i32_0 = arith.constant 0 : i32
    %c0_i32_1 = arith.constant 0 : i32
    return %c0_i32, %c0_i32_0 : i32, i32
  }
  func.func @transform_3(%arg0: i32) -> (i32, i32) {
    %c0_i32 = arith.constant 0 : i32
    %c0_i32_0 = arith.constant 0 : i32
    %c0_i32_1 = arith.constant 0 : i32
    return %c0_i32, %c0_i32_0 : i32, i32
  }
  func.func @transform_4(%arg0: i32) -> (i32, i32) {
    %c0_i32 = arith.constant 0 : i32
    %c0_i32_0 = arith.constant 0 : i32
    %c0_i32_1 = arith.constant 0 : i32
    return %c0_i32, %c0_i32_0 : i32, i32
  }
  func.func @transform_5(%arg0: i32) -> (i32, i32) {
    %c0_i32 = arith.constant 0 : i32
    %c0_i32_0 = arith.constant 0 : i32
    return %arg0, %c0_i32 : i32, i32
  }
}

</mosaic_0001>

<bundles_post_ra>
// kernel: tpu_custom_call.1
= control target key start
LH: loop header
LB: loop body
LE: loop exit
PB: predicated region body
PF: predicated region fallthrough
CT: control target
= control target key end

     0   :  { %vm28_vm0 = vcmask 1043456   ;;  %v212_v0 = vmov 0.0   ;;  %vm24_vm1 = vcmask 31744   ;;  %vm213_vm2 = vmmov 0   ;;  %s265_s3 = inlined_call_operand.vmem [shape: f32[4,4], index: 3, kind: input, shape index: {}]   ;;  %s266_s2 = inlined_call_operand.vmem [shape: f32[4,4], index: 2, kind: input, shape index: {}]   ;;  %s267_s1 = inlined_call_operand.vmem [shape: f32[8,4], index: 1, kind: input, shape index: {}]   ;;  %s268_s0 = inlined_call_operand.vmem [shape: f32[8,4], index: 0, kind: input, shape index: {}]   ;;  %s269_s4 = inlined_call_operand.vmem [shape: f32[1,4], index: 4, kind: input, shape index: {}]   ;;  %s270_s5 = inlined_call_operand.vmem [shape: f32[8,4], index: 5, kind: output, shape index: {}]  }
   0x1   :  { %200 = vmatprep.subr.mxu0 %v212_v0  ;;  %205 = vmatprep.subr.mxu1 %v212_v0  ;;  %v23_v1 = vld [vmem:[%s265_s3] sm:$0xf] }
   0x2   :  { %v21_v2 = vld [vmem:[%s266_s2] sm:$0xf]  ;;  %201 = vmatpush3.msk.msra.mxu0 %vm28_vm0, %v23_v1  ;;  %202 = vmatprep.mubr.msk.f32.mxu0 %vm213_vm2, %v212_v0 }
   0x3   :  { %v22_v3 = vld [vmem:[%s267_s1] sm:$0xff]  ;;  %206 = vmatpush3.msk.msra.mxu1 %vm28_vm0, %v21_v2  ;;  %207 = vmatprep.mubr.msk.f32.mxu1 %vm213_vm2, %v212_v0 }
   0x4   :  { %v20_v4 = vld [vmem:[%s268_s0] sm:$0xff]  ;;  %203 = vmatmul.mubr.msk.f32.vlgmr.msra.gmra.mxu0 %vm24_vm1, %v22_v3 }
   0x5   :  { %208 = vmatmul.mubr.msk.f32.vlgmr.msra.gmra.mxu1 %vm24_vm1, %v20_v4  ;;  %v195_v7 = vld [vmem:[%s269_s4] ss:$0 sm:$0xff] }
  0xc4   :  { %v98_v5 = vpop.f32.mrf.mxu0 }
  0xc5   :  { %v174_v6 = vpop.f32.mrf.mxu1 }
  0xc6   :  { %v175_v8 = vadd.f32 %v174_v6, %v98_v5  ;;  %v204_v9 = vpop.f32.mrf.mxu0 }
  0xc7   :  { %v209_v10 = vpop.f32.mrf.mxu1 }
  0xc8   :  { %v185_v11 = vadd.f32 %v195_v7, %v175_v8 }
  0xca   :  { %186 = vst.msk [vmem:[%s270_s5] sm:$0xff] %vm24_vm1, %v185_v11 }

</bundles_post_ra>
